<compile_context>
chip_gen: v6e
topology: v6e:2x2x1
jax: 0.10.0
libtpu: 0.0.40
codegen_flags: <defaults>
</compile_context>

<pallas_src>
import functools

import jax
import jax.numpy as jnp
import numpy as np
from jax import lax
from jax.experimental import pallas as pl
from jax.experimental.pallas import tpu as pltpu

_LANES = 128
_MAX_BLOCK_ROWS = 4096  # (4096,128) f32 = 2 MiB per input block


def _round_up(a, b):
    return ((a + b - 1) // b) * b


def _num_tensorcores():
    """Best-effort TensorCores-per-device (v7x / megacore -> 2, v5e/v6e -> 1)."""
    try:
        info = pltpu.get_tpu_info()
        for attr in ("num_cores", "cores_per_chip", "num_tensorcores",
                     "tensor_cores_per_chip", "num_tensor_cores"):
            v = getattr(info, attr, None)
            if isinstance(v, int) and v >= 1:
                return max(1, min(int(v), 2))
    except Exception:
        pass
    try:
        kind = jax.devices()[0].device_kind.lower()
    except Exception:
        return 1
    single_core = ("lite", "v5e", "v6e", "v6 lite", "v5 lite", "v2", "v3")
    return 1 if any(t in kind for t in single_core) else 2


def _make_kernel(beta, eps, block_rows, valid_rows, num_blocks,
                 blocks_per_split, needs_tail_mask, needs_clamp):
    """Kernel builder for static beta / eps / layout parameters."""
    sub_blocks = block_rows // 8

    def compute_term(x, y):
        if beta == 1:
            # x * log((x+eps)/(y+eps)) - x + y   (one EUP log instead of two)
            return x * jnp.log((x + eps) / (y + eps)) - x + y
        elif beta == 0:
            d = x / (y + eps) + eps
            return d - jnp.log(d) - 1.0
        elif beta == 2:
            # x^2 + y^2 - 2xy == (x - y)^2 ; no transcendentals at all.
            diff = x - y
            return diff * diff
        else:
            if beta < 0:
                x = x + eps
                y = y + eps
            elif beta < 1:
                y = y + eps
            if beta == 0.5:
                xb = jnp.sqrt(x)
                ybm1 = lax.rsqrt(y)
            else:
                # TODO(synk): generic fractional beta is ~4 EUP ops/elem (2 f32
                # pows); on v7x this binds before HBM — a bf16-pow variant would
                # halve EUP cost there at some precision loss.
                xb = x ** beta
                ybm1 = y ** (beta - 1.0)
            yb = ybm1 * y  # y**beta from y**(beta-1), saves one pow
            return xb + (beta - 1.0) * yb - beta * x * ybm1

    def kernel(x_ref, y_ref, sum_ref, min_ref):
        i = pl.program_id(1)

        @pl.when(i == 0)
        def _():
            sum_ref[...] = jnp.zeros_like(sum_ref)
            # 0 is a valid identity here: we only ever test "min < 0".
            min_ref[...] = jnp.zeros_like(min_ref)

        blk = pl.program_id(0) * blocks_per_split + i

        x = x_ref[...].astype(jnp.float32)
        y = y_ref[...].astype(jnp.float32)

        def accumulate(xv, yv):
            # Fused negativity check (pure VPU, hides under DMA).
            blk_min = jnp.minimum(xv, yv).reshape(sub_blocks, 8, _LANES).min(axis=0)
            min_ref[0] = jnp.minimum(min_ref[0], blk_min)
            term = compute_term(xv, yv)
            # Fold the block into one (8,128) vreg of partial sums; the single
            # cross-lane reduce happens once, in the wrapper.
            sum_ref[0] = sum_ref[0] + term.reshape(sub_blocks, 8, _LANES).sum(axis=0)

        if needs_tail_mask:
            # Steady-state blocks: no mask work at all.
            @pl.when(blk < num_blocks - 1)
            def _():
                accumulate(x, y)

            # Final (ragged) block only: mask OOB rows with the neutral value
            # 1.0 so neither the term nor the min sees garbage.  Row-level
            # compare -> no int32 flat-index overflow.
            @pl.when(blk == num_blocks - 1)
            def _():
                row = lax.broadcasted_iota(jnp.int32, (block_rows, _LANES), 0)
                valid = (num_blocks - 1) * block_rows + row < valid_rows
                accumulate(jnp.where(valid, x, 1.0), jnp.where(valid, y, 1.0))
        elif needs_clamp:
            # Extra grid step from the core split maps (clamped) to the last
            # real block; skip it so nothing is double counted.
            @pl.when(blk < num_blocks)
            def _():
                accumulate(x, y)
        else:
            accumulate(x, y)

    return kernel


@functools.partial(jax.jit, static_argnames=("beta", "eps"))
def _beta_div_pallas(x, y, beta, eps):
    n = x.size
    rows = pl.cdiv(n, _LANES)
    lane_pad = rows * _LANES - n

    block_rows = min(_MAX_BLOCK_ROWS, _round_up(rows, 8))
    num_blocks = pl.cdiv(rows, block_rows)

    # Feed both TensorCores on v7x / megacore chips; single grid split on
    # single-core v5e/v6e so block-aligned inputs never pick up extra steps.
    split = _num_tensorcores()
    if num_blocks < 2 or split < 2:
        split = 1
    elif num_blocks % split != 0 and num_blocks < 4 * split:
        split = 1  # tiny odd grids: a duplicate-block step isn't worth it
    blocks_per_split = pl.cdiv(num_blocks, split)
    grid_blocks = split * blocks_per_split
    needs_clamp = grid_blocks > num_blocks

    if lane_pad > 0:
        # Lane-ragged: the (rows,128) reshape needs a copy anyway, so pad with
        # the neutral value 1.0 up to whole blocks and drop all in-kernel
        # masking (term(1,1) == 0 exactly in f32 for every beta branch).
        # TODO(synk): a 1-D BlockSpec feed could avoid this extra HBM copy.
        rows_slab = grid_blocks * block_rows
        total = rows_slab * _LANES
        needs_tail_mask = False
        needs_clamp = False

        def to_slab(a):
            flat = a.reshape(-1)
            flat = jnp.pad(flat, (0, total - n), constant_values=1.0)
            return flat.reshape(rows_slab, _LANES)
    else:
        # Lane-aligned: reshape is free (no HBM copy); ragged tail rows (if
        # any) are handled by an in-kernel mask on the final block only.
        needs_tail_mask = (rows % block_rows) != 0

        def to_slab(a):
            return a.reshape(rows, _LANES)

    x_slab = to_slab(x)
    y_slab = to_slab(y)

    if needs_clamp:
        last_blk = num_blocks - 1

        def in_index(s, i):
            return (jnp.minimum(s * blocks_per_split + i, last_blk), 0)
    else:
        def in_index(s, i):
            return (s * blocks_per_split + i, 0)

    in_spec = pl.BlockSpec((block_rows, _LANES), in_index)
    acc_spec = pl.BlockSpec((1, 8, _LANES), lambda s, i: (s, 0, 0))

    # Explicit VMEM budget: 2 inputs x 2 pipeline buffers + generous headroom
    # for f32 upcast / spilled block-sized temporaries.  Keeps v5e (16 MiB
    # scoped default) from shrinking the tiles and stays within v7x's 64 MiB.
    block_elems = block_rows * _LANES
    vmem_limit = (2 * block_elems * (x.dtype.itemsize + y.dtype.itemsize)
                  + 10 * block_elems * 4 + (2 << 20))
    vmem_limit = int(min(max(vmem_limit, 32 << 20), 48 << 20))

    # Beta-dependent cost hint for XLA scheduling around the custom call.
    if beta == 2:
        flops, transc = 4 * n, 0
    elif beta == 1 or beta == 0 or beta == 0.5:
        flops, transc = 8 * n, 2 * n
    else:
        flops, transc = 10 * n, 4 * n
    bytes_accessed = (x_slab.size * x_slab.dtype.itemsize
                      + y_slab.size * y_slab.dtype.itemsize
                      + 2 * split * 8 * _LANES * 4)
    cost = pl.CostEstimate(flops=flops, transcendentals=transc,
                           bytes_accessed=bytes_accessed)

    sums, mins = pl.pallas_call(
        _make_kernel(beta, float(eps), block_rows, rows, num_blocks,
                     blocks_per_split, needs_tail_mask, needs_clamp),
        out_shape=(
            jax.ShapeDtypeStruct((split, 8, _LANES), jnp.float32),
            jax.ShapeDtypeStruct((split, 8, _LANES), jnp.float32),
        ),
        grid_spec=pltpu.PrefetchScalarGridSpec(
            num_scalar_prefetch=0,
            grid=(split, blocks_per_split),
            in_specs=[in_spec, in_spec],
            out_specs=(acc_spec, acc_spec),
        ),
        compiler_params=pltpu.CompilerParams(
            dimension_semantics=("parallel", "arbitrary"),
            vmem_limit_bytes=vmem_limit,
        ),
        cost_estimate=cost,
    )(x_slab, y_slab)

    loss = jnp.sum(sums) / jnp.float32(n)
    if beta != 0 and beta != 1:
        loss = loss / jnp.float32(beta * (beta - 1.0))
    min_val = jnp.min(mins)
    return loss, min_val


def beta_divergence_loss(x, y, beta=1, eps=1e-12):
    """Mirrors BetaDivergenceLoss.forward (negativity check + mean divergence)."""
    loss, min_val = _beta_div_pallas(x, y, beta=beta, eps=eps)
    # Single host<->device sync; the min is computed for free inside the kernel.
    if float(jax.device_get(min_val)) < 0.0:
        raise ValueError(
            "Negative values in the inputs, can't perform beta divergence."
        )
    return loss


def _beta_div_ref(x, y, beta=1, eps=1e-12):
    """Pure-JAX reference (same math as the torch module)."""
    x = x.astype(jnp.float32)
    y = y.astype(jnp.float32)
    if beta == 1:
        return jnp.mean(x * (jnp.log(x + eps) - jnp.log(y + eps)) - x + y)
    elif beta == 0:
        d = x / (y + eps) + eps
        return jnp.mean(d - jnp.log(d) - 1.0)
    else:
        if beta < 0:
            x = x + eps
            y = y + eps
        elif beta < 1:
            y = y + eps
        num = jnp.mean(
            x ** beta + (beta - 1.0) * (y ** beta) - beta * x * (y ** (beta - 1.0))
        )
        return num / (beta * (beta - 1.0))


if __name__ == "__main__":
    key = jax.random.PRNGKey(0)
    kx, ky = jax.random.split(key)
    # Non-negative inputs (e.g. magnitude spectrograms), NCHW-ish small shape.
    x = jnp.abs(jax.random.normal(kx, (2, 4, 16, 16), dtype=jnp.float32))
    y = jnp.abs(jax.random.normal(ky, (2, 4, 16, 16), dtype=jnp.float32))

    for beta in (1, 0, 2, 0.5, 1.5):
        out = jax.block_until_ready(beta_divergence_loss(x, y, beta=beta))
        ref = _beta_div_ref(x, y, beta=beta)
        np.testing.assert_allclose(
            np.asarray(out), np.asarray(ref), rtol=1e-5, atol=1e-6
        )

    # Lane-ragged path (n % 128 != 0): exercises the neutral 1.0 padding.
    kx1, ky1 = jax.random.split(jax.random.PRNGKey(1))
    x1 = jnp.abs(jax.random.normal(kx1, (3, 5, 7, 11), dtype=jnp.float32))
    y1 = jnp.abs(jax.random.normal(ky1, (3, 5, 7, 11), dtype=jnp.float32))
    for beta in (1, 1.5):
        out = jax.block_until_ready(beta_divergence_loss(x1, y1, beta=beta))
        ref = _beta_div_ref(x1, y1, beta=beta)
        np.testing.assert_allclose(
            np.asarray(out), np.asarray(ref), rtol=1e-5, atol=1e-6
        )

    # Row-ragged path (n % 128 == 0, rows % block_rows != 0): exercises the
    # in-kernel masked final block (no wrapper pad copy).
    kx2, ky2 = jax.random.split(jax.random.PRNGKey(2))
    x2 = jnp.abs(jax.random.normal(kx2, (2, 4, 13, 16), dtype=jnp.float32))
    y2 = jnp.abs(jax.random.normal(ky2, (2, 4, 13, 16), dtype=jnp.float32))
    for beta in (1, 2):
        out = jax.block_until_ready(beta_divergence_loss(x2, y2, beta=beta))
        ref = _beta_div_ref(x2, y2, beta=beta)
        np.testing.assert_allclose(
            np.asarray(out), np.asarray(ref), rtol=1e-5, atol=1e-6
        )

    # Larger aligned case + multi-block / (possible) two-core split + tail mask.
    kx3, ky3 = jax.random.split(jax.random.PRNGKey(3))
    x3 = jnp.abs(jax.random.normal(kx3, (4, 8, 72, 100), dtype=jnp.float32))
    y3 = jnp.abs(jax.random.normal(ky3, (4, 8, 72, 100), dtype=jnp.float32))
    for beta in (1, 2):
        out = jax.block_until_ready(beta_divergence_loss(x3, y3, beta=beta))
        ref = _beta_div_ref(x3, y3, beta=beta)
        np.testing.assert_allclose(
            np.asarray(out), np.asarray(ref), rtol=1e-5, atol=1e-6
        )
    kx4, ky4 = jax.random.split(jax.random.PRNGKey(4))
    x4 = jnp.abs(jax.random.normal(kx4, (2, 4, 272, 256), dtype=jnp.float32))
    y4 = jnp.abs(jax.random.normal(ky4, (2, 4, 272, 256), dtype=jnp.float32))
    out = jax.block_until_ready(beta_divergence_loss(x4, y4, beta=1))
    ref = _beta_div_ref(x4, y4, beta=1)
    np.testing.assert_allclose(np.asarray(out), np.asarray(ref), rtol=1e-5, atol=1e-6)

    # Negativity check semantics (raises like the torch module).
    try:
        beta_divergence_loss(x.at[0, 0, 0, 0].set(-1.0), y)
        raise AssertionError("expected ValueError for negative input")
    except ValueError:
        pass

    print("KERNEL_OK")
</pallas_src>

<mosaic_0001>
module attributes {stable_mosaic.version = 11 : i64} {
  func.func @kernel(%arg0: i32, %arg1: i32, %arg2: memref<16x128xf32, #tpu.memory_space<vmem>>, %arg3: memref<16x128xf32, #tpu.memory_space<vmem>>, %arg4: memref<1x8x128xf32, #tpu.memory_space<vmem>>, %arg5: memref<1x8x128xf32, #tpu.memory_space<vmem>>) attributes {dimension_semantics = [#tpu.dimension_semantics<parallel>, #tpu.dimension_semantics<arbitrary>], iteration_bounds = array<i64: 1, 1>, scalar_prefetch = 0 : i64, scratch_operands = 0 : i64, tpu.core_type = #tpu.core_type<tc>, window_params = [{transform_indices = @transform_0, window_bounds = array<i64: 16, 128>}, {transform_indices = @transform_1, window_bounds = array<i64: 16, 128>}, {transform_indices = @transform_2, window_bounds = array<i64: 1, 8, 128>}, {transform_indices = @transform_3, window_bounds = array<i64: 1, 8, 128>}]} {
    %c0_i32 = arith.constant 0 : i32
    %0 = arith.cmpi eq, %arg1, %c0_i32 : i32
    %1 = arith.extui %0 : i1 to i32
    %c0_i32_0 = arith.constant 0 : i32
    %2 = arith.cmpi ne, %1, %c0_i32_0 : i32
    scf.if %2 {
      %cst_19 = arith.constant 0.000000e+00 : f32
      %31 = vector.broadcast %cst_19 : f32 to vector<1x8x128xf32>
      %c0_20 = arith.constant 0 : index
      %c0_21 = arith.constant 0 : index
      %c0_22 = arith.constant 0 : index
      %32 = vector.load %arg4[%c0_20, %c0_21, %c0_22] : memref<1x8x128xf32, #tpu.memory_space<vmem>>, vector<1x8x128xf32>
      tpu.vector_store %arg4[%c0_20, %c0_21, %c0_22], %31 {strides = array<i32>} : memref<1x8x128xf32, #tpu.memory_space<vmem>>, vector<1x8x128xf32>,
      %cst_23 = arith.constant 0.000000e+00 : f32
      %33 = vector.broadcast %cst_23 : f32 to vector<1x8x128xf32>
      %c0_24 = arith.constant 0 : index
      %c0_25 = arith.constant 0 : index
      %c0_26 = arith.constant 0 : index
      %34 = vector.load %arg5[%c0_24, %c0_25, %c0_26] : memref<1x8x128xf32, #tpu.memory_space<vmem>>, vector<1x8x128xf32>
      tpu.vector_store %arg5[%c0_24, %c0_25, %c0_26], %33 {strides = array<i32>} : memref<1x8x128xf32, #tpu.memory_space<vmem>>, vector<1x8x128xf32>,
    } else {
    }
    %c0 = arith.constant 0 : index
    %c0_1 = arith.constant 0 : index
    %3 = vector.load %arg2[%c0, %c0_1] : memref<16x128xf32, #tpu.memory_space<vmem>>, vector<16x128xf32>
    %c0_2 = arith.constant 0 : index
    %c0_3 = arith.constant 0 : index
    %4 = vector.load %arg3[%c0_2, %c0_3] : memref<16x128xf32, #tpu.memory_space<vmem>>, vector<16x128xf32>
    %5 = arith.minimumf %3, %4 : vector<16x128xf32>
    %6 = vector.shape_cast %5 : vector<16x128xf32> to vector<2x8x128xf32>
    %cst = arith.constant dense<0x7F800000> : vector<8x128xf32>
    %7 = vector.multi_reduction <minimumf>, %6, %cst [0] : vector<2x8x128xf32> to vector<8x128xf32>
    %c0_4 = arith.constant 0 : index
    %c0_5 = arith.constant 0 : index
    %c0_6 = arith.constant 0 : index
    %8 = vector.load %arg5[%c0_4, %c0_5, %c0_6] : memref<1x8x128xf32, #tpu.memory_space<vmem>>, vector<1x8x128xf32>
    %9 = vector.shape_cast %8 : vector<1x8x128xf32> to vector<8x128xf32>
    %10 = arith.minimumf %9, %7 : vector<8x128xf32>
    %c0_7 = arith.constant 0 : index
    %c0_8 = arith.constant 0 : index
    %c0_9 = arith.constant 0 : index
    %11 = vector.load %arg5[%c0_7, %c0_8, %c0_9] : memref<1x8x128xf32, #tpu.memory_space<vmem>>, vector<1x8x128xf32>
    %12 = vector.shape_cast %11 : vector<1x8x128xf32> to vector<8x128xf32>
    %13 = vector.shape_cast %10 : vector<8x128xf32> to vector<1x8x128xf32>
    tpu.vector_store %arg5[%c0_7, %c0_8, %c0_9], %13 {strides = array<i32>} : memref<1x8x128xf32, #tpu.memory_space<vmem>>, vector<1x8x128xf32>,
    %cst_10 = arith.constant 9.99999996E-13 : f32
    %14 = vector.broadcast %cst_10 : f32 to vector<16x128xf32>
    %15 = arith.addf %3, %14 : vector<16x128xf32>
    %cst_11 = arith.constant 9.99999996E-13 : f32
    %16 = vector.broadcast %cst_11 : f32 to vector<16x128xf32>
    %17 = arith.addf %4, %16 : vector<16x128xf32>
    %18 = arith.divf %15, %17 : vector<16x128xf32>
    %19 = math.log %18 : vector<16x128xf32>
    %20 = arith.mulf %3, %19 : vector<16x128xf32>
    %21 = arith.subf %20, %3 : vector<16x128xf32>
    %22 = arith.addf %21, %4 : vector<16x128xf32>
    %c0_12 = arith.constant 0 : index
    %c0_13 = arith.constant 0 : index
    %c0_14 = arith.constant 0 : index
    %23 = vector.load %arg4[%c0_12, %c0_13, %c0_14] : memref<1x8x128xf32, #tpu.memory_space<vmem>>, vector<1x8x128xf32>
    %24 = vector.shape_cast %23 : vector<1x8x128xf32> to vector<8x128xf32>
    %25 = vector.shape_cast %22 : vector<16x128xf32> to vector<2x8x128xf32>
    %cst_15 = arith.constant dense<0.000000e+00> : vector<8x128xf32>
    %26 = vector.multi_reduction <add>, %25, %cst_15 [0] : vector<2x8x128xf32> to vector<8x128xf32>
    %27 = arith.addf %24, %26 : vector<8x128xf32>
    %c0_16 = arith.constant 0 : index
    %c0_17 = arith.constant 0 : index
    %c0_18 = arith.constant 0 : index
    %28 = vector.load %arg4[%c0_16, %c0_17, %c0_18] : memref<1x8x128xf32, #tpu.memory_space<vmem>>, vector<1x8x128xf32>
    %29 = vector.shape_cast %28 : vector<1x8x128xf32> to vector<8x128xf32>
    %30 = vector.shape_cast %27 : vector<8x128xf32> to vector<1x8x128xf32>
    tpu.vector_store %arg4[%c0_16, %c0_17, %c0_18], %30 {strides = array<i32>} : memref<1x8x128xf32, #tpu.memory_space<vmem>>, vector<1x8x128xf32>,
    return
  }
  func.func @transform_0(%arg0: i32, %arg1: i32) -> (i32, i32) {
    %c1_i32 = arith.constant 1 : i32
    %0 = arith.muli %arg0, %c1_i32 : i32
    %1 = arith.addi %0, %arg1 : i32
    %c0_i32 = arith.constant 0 : i32
    %c0_i32_0 = arith.constant 0 : i32
    return %1, %c0_i32 : i32, i32
  }
  func.func @transform_1(%arg0: i32, %arg1: i32) -> (i32, i32) {
    %c1_i32 = arith.constant 1 : i32
    %0 = arith.muli %arg0, %c1_i32 : i32
    %1 = arith.addi %0, %arg1 : i32
    %c0_i32 = arith.constant 0 : i32
    %c0_i32_0 = arith.constant 0 : i32
    return %1, %c0_i32 : i32, i32
  }
  func.func @transform_2(%arg0: i32, %arg1: i32) -> (i32, i32, i32) {
    %c0_i32 = arith.constant 0 : i32
    %c0_i32_0 = arith.constant 0 : i32
    %c0_i32_1 = arith.constant 0 : i32
    return %arg0, %c0_i32, %c0_i32_0 : i32, i32, i32
  }
  func.func @transform_3(%arg0: i32, %arg1: i32) -> (i32, i32, i32) {
    %c0_i32 = arith.constant 0 : i32
    %c0_i32_0 = arith.constant 0 : i32
    %c0_i32_1 = arith.constant 0 : i32
    return %arg0, %c0_i32, %c0_i32_0 : i32, i32, i32
  }
}

</mosaic_0001>

<bundles_post_ra>
// kernel: _beta_div_pallas.1
= control target key start
LH: loop header
LB: loop body
LE: loop exit
PB: predicated region body
PF: predicated region fallthrough
CT: control target
= control target key end

     0   :  { %s162_s0 = inlined_call_operand.vmem [shape: f32[16,128], index: 0, kind: input, shape index: {}]   ;;  %s163_s1 = inlined_call_operand.vmem [shape: f32[16,128], index: 1, kind: input, shape index: {}]   ;;  %s164_s3 = inlined_call_operand.vmem [shape: f32[1,8,128], index: 3, kind: output, shape index: {1}]   ;;  %s165_s2 = inlined_call_operand.vmem [shape: f32[1,8,128], index: 2, kind: output, shape index: {0}]  }
   0x1   :  { %v63_v0 = vld [vmem:[%s162_s0] sm:$0xff]  ;;  %v64_v2 = vld [vmem:[%s162_s0 + $0x8] sm:$0xff] }
   0x2   :  { %v65_v1 = vld [vmem:[%s163_s1] sm:$0xff]  ;;  %v66_v3 = vld [vmem:[%s163_s1 + $0x8] sm:$0xff]  ;;  %v73_v10 = vadd.f32 1e-12, %v63_v0  ;;  %v74_v11 = vadd.f32 1e-12, %v64_v2 }
   0x3   :  { %v67_v4 = vmin.f32 %v63_v0, %v65_v1  ;;  %v68_v5 = vmin.f32 %v64_v2, %v66_v3  ;;  %v75_v6 = vadd.f32 1e-12, %v65_v1  ;;  %v76_v7 = vadd.f32 1e-12, %v66_v3 }
   0x5   :  { %v69_v8 = vmin.f32 %v67_v4, %v68_v5  ;;  %116 = vrcp.f32 %v75_v6 }
   0x6   :  { %118 = vrcp.f32 %v76_v7 }
   0x7   :  { %v71_v9 = vmin.f32 %v69_v8, 0.0 }
   0x9   :  { %72 = vst [vmem:[%s164_s3] sm:$0xff] %v71_v9 }
  0x12   :  { %v117_v12 = vpop.eup %116 }
  0x13   :  { %v119_v13 = vpop.eup %118  ;;  %v78_v14 = vmul.f32 %v117_v12, %v73_v10 }
  0x14   :  { %v80_v15 = vmul.f32 %v119_v13, %v74_v11 }
  0x15   :  { %120 = vlog2.f32 %v78_v14 }
  0x16   :  { %122 = vlog2.f32 %v80_v15 }
  0x22   :  { %v121_v16 = vpop.eup %120 }
  0x23   :  { %v123_v17 = vpop.eup %122  ;;  %v82_v18 = vmul.f32 0.6931472, %v121_v16 }
  0x24   :  { %v84_v19 = vmul.f32 0.6931472, %v123_v17 }
  0x25   :  { %v85_v20 = vmul.f32 %v82_v18, %v63_v0 }
  0x26   :  { %v86_v21 = vmul.f32 %v84_v19, %v64_v2 }
  0x27   :  { %v87_v22 = vsub.f32 %v85_v20, %v63_v0 }
  0x28   :  { %v88_v23 = vsub.f32 %v86_v21, %v64_v2 }
  0x29   :  { %v89_v24 = vadd.f32 %v87_v22, %v65_v1 }
  0x2a   :  { %v90_v25 = vadd.f32 %v88_v23, %v66_v3 }
  0x2c   :  { %v92_v26 = vadd.f32 %v90_v25, %v89_v24 }
  0x2e   :  { %94 = vst [vmem:[%s165_s2] sm:$0xff] %v92_v26 }

</bundles_post_ra>
